<compile_context>
chip_gen: v7x
topology: tpu7x:2x2x1
jax: 0.10.0
libtpu: 0.0.40
codegen_flags: <defaults>
</compile_context>

<pallas_src>
import functools

import jax
import jax.numpy as jnp
from jax.experimental import pallas as pl
from jax.experimental.pallas import tpu as pltpu


def _choose_factorization(K):
    """Two-level window-sum factorization K = K1*K2 + r minimizing VMEM loads per output."""
    best = None
    for k1 in range(2, K):
        k2 = K // k1
        r = K - k1 * k2
        cost = k1 + k2 + r + 2  # level-1 loads + level-2 loads + leftover taps + partial st/ld
        if best is None or cost < best[0]:
            best = (cost, k1, k2)
    naive_cost = K - 1  # center tap reuses the already-loaded x tile
    if best is not None and best[0] < naive_cost:
        return best[1], best[2]
    return 1, 0


def _padded_tile_bytes(rows, cols, dtype):
    """VMEM footprint of a (rows, cols) buffer after (sublane, 128-lane) tiling/padding."""
    itemsize = jnp.dtype(dtype).itemsize
    sub = max(8, 32 // itemsize)  # f32 -> 8, bf16 -> 16, int8/fp8 -> 32 sublanes per tile
    rows_p = -(-rows // sub) * sub
    cols_p = -(-cols // 128) * 128
    return rows_p * cols_p * itemsize


def _vmem_need_bytes(TB, L, C, pad, K1, dtype):
    LC = L * C
    need = 2 * _padded_tile_bytes(TB, LC, dtype)               # x block, double-buffered
    need += 2 * 2 * _padded_tile_bytes(TB, LC, dtype)          # res + mean blocks, double-buffered
    need += _padded_tile_bytes(TB, (L + 2 * pad) * C, dtype)   # replicate-padded scratch
    if K1 > 1:
        plen = (L + 2 * pad - K1 + 1) * C
        need += _padded_tile_bytes(TB, plen, jnp.float32)      # level-1 partial sums (f32)
    return need


def _pick_batch_tile(B, L, C, pad, K1, dtype, budget_bytes=40 << 20):
    """Largest batch tile whose padded VMEM working set fits the budget.

    TB is either a multiple of 8 dividing B (sublane-tileable) or B itself; prefers keeping
    >=4 (then >=2) grid steps so both v7x TensorCores get overlapping, pipelined work.
    """
    cands = sorted({d for d in range(8, B + 1, 8) if B % d == 0} | {B})
    fitting = [tb for tb in cands if _vmem_need_bytes(tb, L, C, pad, K1, dtype) <= budget_bytes]
    if not fitting:
        # TODO(synk): for very large per-batch L*C add a halo-free channel/time tile axis.
        fitting = [cands[0]]
    for min_steps in (4, 2, 1):
        ok = [tb for tb in fitting if B // tb >= min_steps]
        if ok:
            tb = max(ok)
            return tb, _vmem_need_bytes(tb, L, C, pad, K1, dtype)
    tb = max(fitting)
    return tb, _vmem_need_bytes(tb, L, C, pad, K1, dtype)


def _decomp_kernel(x_ref, res_ref, mean_ref, *scratch, L, C, K, PAD, K1, K2):
    # x_ref / res_ref / mean_ref: (TB, L*C) lane-dense blocks.
    LC = L * C
    if K1 > 1:
        xpad_ref, part_ref = scratch
    else:
        (xpad_ref,) = scratch

    x = x_ref[...]                 # (TB, L*C), input dtype
    xf = x.astype(jnp.float32)

    if K > 1:
        # Replicate-padded flat sequence in VMEM scratch (no padded HBM copy).
        xpad_ref[:, pl.ds(PAD * C, LC)] = x
        if PAD > 0:
            first = x[:, 0:C]
            last = x[:, LC - C:LC]
            for q in range(PAD):   # direct halo-row writes (2*PAD*C lanes total)
                xpad_ref[:, pl.ds(q * C, C)] = first
                xpad_ref[:, pl.ds((PAD + L + q) * C, C)] = last

    if K1 > 1:
        # Level 1: K1-tap partial sums over the padded sequence (f32 accumulation).
        PLEN = (L + 2 * PAD - K1 + 1) * C
        pacc = xpad_ref[:, pl.ds(0, PLEN)].astype(jnp.float32)
        for i in range(1, K1):
            pacc = pacc + xpad_ref[:, pl.ds(i * C, PLEN)].astype(jnp.float32)
        part_ref[...] = pacc
        # Level 2: stride-K1 sum of K2 partials (+ leftover taps straight from xpad).
        acc = part_ref[:, pl.ds(0, LC)]
        for m in range(1, K2):
            acc = acc + part_ref[:, pl.ds(m * K1 * C, LC)]
        for j in range(K1 * K2, K):
            acc = acc + xpad_ref[:, pl.ds(j * C, LC)].astype(jnp.float32)
    else:
        # Naive K-tap sum; center tap (j == PAD) reuses the x tile already in registers.
        acc = xf
        for j in range(K):
            if j == PAD:
                continue
            acc = acc + xpad_ref[:, pl.ds(j * C, LC)].astype(jnp.float32)

    mean = acc * (1.0 / K)
    mean_ref[...] = mean.astype(mean_ref.dtype)
    res_ref[...] = (xf - mean).astype(res_ref.dtype)


def series_decomp(x, kernel_size):
    """x: (B, L, C) -> (res, moving_mean), both (B, L, C). Requires odd kernel_size."""
    B, L, C = x.shape
    assert kernel_size >= 1 and kernel_size % 2 == 1, "use an odd kernel_size (standard DLinear)"
    pad = (kernel_size - 1) // 2
    LC = L * C
    K1, K2 = _choose_factorization(kernel_size)

    TB, vmem_need = _pick_batch_tile(B, L, C, pad, K1, x.dtype)
    grid = (B // TB,)

    # Lane-dense view: free row-major reshape so the last (lane) dim is L*C, not C.
    x_flat = x.reshape(B, LC)

    scratch_shapes = [pltpu.VMEM((TB, (L + 2 * pad) * C), x.dtype)]
    if K1 > 1:
        scratch_shapes.append(pltpu.VMEM((TB, (L + 2 * pad - K1 + 1) * C), jnp.float32))

    kernel = functools.partial(
        _decomp_kernel, L=L, C=C, K=kernel_size, PAD=pad, K1=K1, K2=K2)
    vmem_limit = int(min(max(vmem_need * 5 // 4, 16 << 20), 48 << 20))

    res, mean = pl.pallas_call(
        kernel,
        out_shape=(
            jax.ShapeDtypeStruct((B, LC), x.dtype),
            jax.ShapeDtypeStruct((B, LC), x.dtype),
        ),
        grid_spec=pltpu.PrefetchScalarGridSpec(
            num_scalar_prefetch=0,
            grid=grid,
            in_specs=[pl.BlockSpec((TB, LC), lambda b: (b, 0))],
            out_specs=[
                pl.BlockSpec((TB, LC), lambda b: (b, 0)),
                pl.BlockSpec((TB, LC), lambda b: (b, 0)),
            ],
            scratch_shapes=scratch_shapes,
        ),
        compiler_params=pltpu.CompilerParams(
            dimension_semantics=("parallel",),
            vmem_limit_bytes=vmem_limit,
        ),
    )(x_flat)
    return res.reshape(B, L, C), mean.reshape(B, L, C)


def _reference(x, kernel_size):
    pad = (kernel_size - 1) // 2
    xf = x.astype(jnp.float32)
    front = jnp.repeat(xf[:, 0:1, :], pad, axis=1)
    end = jnp.repeat(xf[:, -1:, :], pad, axis=1)
    xp = jnp.concatenate([front, xf, end], axis=1)
    L = x.shape[1]
    windows = jnp.stack([xp[:, j:j + L, :] for j in range(kernel_size)], axis=0)
    mean = windows.mean(axis=0)
    return (xf - mean).astype(x.dtype), mean.astype(x.dtype)


if __name__ == "__main__":
    key = jax.random.PRNGKey(0)

    # Config 1: small sanity shape (naive tap path, single grid step).
    B, L, C, K = 2, 16, 8, 5
    x1 = jax.random.normal(key, (B, L, C), dtype=jnp.float32)
    res1, mean1 = series_decomp(x1, K)
    jax.block_until_ready((res1, mean1))
    res1_ref, mean1_ref = _reference(x1, K)
    assert jnp.allclose(res1, res1_ref, atol=1e-4), "res mismatch (config 1)"
    assert jnp.allclose(mean1, mean1_ref, atol=1e-4), "moving_mean mismatch (config 1)"

    # Config 2: DLinear-style odd channel count and default kernel_size=25 (hierarchical sum).
    B, L, C, K = 4, 40, 7, 25
    x2 = jax.random.normal(jax.random.PRNGKey(1), (B, L, C), dtype=jnp.float32)
    res2, mean2 = series_decomp(x2, K)
    jax.block_until_ready((res2, mean2))
    res2_ref, mean2_ref = _reference(x2, K)
    assert jnp.allclose(res2, res2_ref, atol=1e-4), "res mismatch (config 2)"
    assert jnp.allclose(mean2, mean2_ref, atol=1e-4), "moving_mean mismatch (config 2)"

    # Config 3: batch tiling TB < B with a multi-step "parallel" grid.
    B, L, C, K = 16, 24, 7, 25
    x3 = jax.random.normal(jax.random.PRNGKey(2), (B, L, C), dtype=jnp.float32)
    res3, mean3 = series_decomp(x3, K)
    jax.block_until_ready((res3, mean3))
    res3_ref, mean3_ref = _reference(x3, K)
    assert jnp.allclose(res3, res3_ref, atol=1e-4), "res mismatch (config 3)"
    assert jnp.allclose(mean3, mean3_ref, atol=1e-4), "moving_mean mismatch (config 3)"

    print("KERNEL_OK")
</pallas_src>

<mosaic_0001>
module attributes {stable_mosaic.version = 11 : i64} {
  func.func @_decomp_kernel(%arg0: i32, %arg1: memref<2x128xf32, #tpu.memory_space<vmem>>, %arg2: memref<2x128xf32, #tpu.memory_space<vmem>>, %arg3: memref<2x128xf32, #tpu.memory_space<vmem>>, %arg4: memref<2x160xf32, #tpu.memory_space<vmem>>) attributes {dimension_semantics = [#tpu.dimension_semantics<parallel>], iteration_bounds = array<i64: 1>, scalar_prefetch = 0 : i64, scratch_operands = 1 : i64, tpu.core_type = #tpu.core_type<tc>, window_params = [{transform_indices = @transform_0, window_bounds = array<i64: 2, 128>}, {transform_indices = @transform_1, window_bounds = array<i64: 2, 128>}, {transform_indices = @transform_2, window_bounds = array<i64: 2, 128>}]} {
    %c0 = arith.constant 0 : index
    %c0_0 = arith.constant 0 : index
    %0 = vector.load %arg1[%c0, %c0_0] : memref<2x128xf32, #tpu.memory_space<vmem>>, vector<2x128xf32>
    %c0_1 = arith.constant 0 : index
    %c16 = arith.constant 16 : index
    %1 = vector.load %arg4[%c0_1, %c16] : memref<2x160xf32, #tpu.memory_space<vmem>>, vector<2x128xf32>
    tpu.vector_store %arg4[%c0_1, %c16], %0 {strides = array<i32>} : memref<2x160xf32, #tpu.memory_space<vmem>>, vector<2x128xf32>,
    %2 = vector.extract_strided_slice %0 {offsets = [0, 0], sizes = [2, 8], strides = [1, 1]} : vector<2x128xf32> to vector<2x8xf32>
    %3 = vector.extract_strided_slice %0 {offsets = [0, 120], sizes = [2, 8], strides = [1, 1]} : vector<2x128xf32> to vector<2x8xf32>
    %c0_2 = arith.constant 0 : index
    %c0_3 = arith.constant 0 : index
    %4 = vector.load %arg4[%c0_2, %c0_3] : memref<2x160xf32, #tpu.memory_space<vmem>>, vector<2x8xf32>
    tpu.vector_store %arg4[%c0_2, %c0_3], %2 {strides = array<i32>} : memref<2x160xf32, #tpu.memory_space<vmem>>, vector<2x8xf32>,
    %c0_4 = arith.constant 0 : index
    %c144 = arith.constant 144 : index
    %5 = vector.load %arg4[%c0_4, %c144] : memref<2x160xf32, #tpu.memory_space<vmem>>, vector<2x8xf32>
    tpu.vector_store %arg4[%c0_4, %c144], %3 {strides = array<i32>} : memref<2x160xf32, #tpu.memory_space<vmem>>, vector<2x8xf32>,
    %c0_5 = arith.constant 0 : index
    %c8 = arith.constant 8 : index
    %6 = vector.load %arg4[%c0_5, %c8] : memref<2x160xf32, #tpu.memory_space<vmem>>, vector<2x8xf32>
    tpu.vector_store %arg4[%c0_5, %c8], %2 {strides = array<i32>} : memref<2x160xf32, #tpu.memory_space<vmem>>, vector<2x8xf32>,
    %c0_6 = arith.constant 0 : index
    %c152 = arith.constant 152 : index
    %7 = vector.load %arg4[%c0_6, %c152] : memref<2x160xf32, #tpu.memory_space<vmem>>, vector<2x8xf32>
    tpu.vector_store %arg4[%c0_6, %c152], %3 {strides = array<i32>} : memref<2x160xf32, #tpu.memory_space<vmem>>, vector<2x8xf32>,
    %c0_7 = arith.constant 0 : index
    %c0_8 = arith.constant 0 : index
    %8 = vector.load %arg4[%c0_7, %c0_8] : memref<2x160xf32, #tpu.memory_space<vmem>>, vector<2x128xf32>
    %9 = arith.addf %0, %8 : vector<2x128xf32>
    %c0_9 = arith.constant 0 : index
    %c8_10 = arith.constant 8 : index
    %10 = vector.load %arg4[%c0_9, %c8_10] : memref<2x160xf32, #tpu.memory_space<vmem>>, vector<2x128xf32>
    %11 = arith.addf %9, %10 : vector<2x128xf32>
    %c0_11 = arith.constant 0 : index
    %c24 = arith.constant 24 : index
    %12 = vector.load %arg4[%c0_11, %c24] : memref<2x160xf32, #tpu.memory_space<vmem>>, vector<2x128xf32>
    %13 = arith.addf %11, %12 : vector<2x128xf32>
    %c0_12 = arith.constant 0 : index
    %c32 = arith.constant 32 : index
    %14 = vector.load %arg4[%c0_12, %c32] : memref<2x160xf32, #tpu.memory_space<vmem>>, vector<2x128xf32>
    %15 = arith.addf %13, %14 : vector<2x128xf32>
    %cst = arith.constant 2.000000e-01 : f32
    %16 = vector.broadcast %cst : f32 to vector<2x128xf32>
    %17 = arith.mulf %15, %16 : vector<2x128xf32>
    %c0_13 = arith.constant 0 : index
    %c0_14 = arith.constant 0 : index
    %18 = vector.load %arg3[%c0_13, %c0_14] : memref<2x128xf32, #tpu.memory_space<vmem>>, vector<2x128xf32>
    tpu.vector_store %arg3[%c0_13, %c0_14], %17 {strides = array<i32>} : memref<2x128xf32, #tpu.memory_space<vmem>>, vector<2x128xf32>,
    %19 = arith.subf %0, %17 : vector<2x128xf32>
    %c0_15 = arith.constant 0 : index
    %c0_16 = arith.constant 0 : index
    %20 = vector.load %arg2[%c0_15, %c0_16] : memref<2x128xf32, #tpu.memory_space<vmem>>, vector<2x128xf32>
    tpu.vector_store %arg2[%c0_15, %c0_16], %19 {strides = array<i32>} : memref<2x128xf32, #tpu.memory_space<vmem>>, vector<2x128xf32>,
    return
  }
  func.func @transform_0(%arg0: i32) -> (i32, i32) {
    %c0_i32 = arith.constant 0 : i32
    %c0_i32_0 = arith.constant 0 : i32
    return %arg0, %c0_i32 : i32, i32
  }
  func.func @transform_1(%arg0: i32) -> (i32, i32) {
    %c0_i32 = arith.constant 0 : i32
    %c0_i32_0 = arith.constant 0 : i32
    return %arg0, %c0_i32 : i32, i32
  }
  func.func @transform_2(%arg0: i32) -> (i32, i32) {
    %c0_i32 = arith.constant 0 : i32
    %c0_i32_0 = arith.constant 0 : i32
    return %arg0, %c0_i32 : i32, i32
  }
}

</mosaic_0001>

<bundles_post_ra>
// kernel: tpu_custom_call.1
= control target key start
LH: loop header
LB: loop body
LE: loop exit
PB: predicated region body
PF: predicated region fallthrough
CT: control target
= control target key end

     0   :  { %8 = vsyncpa [#allocation4], 0  ;;  %s281_s0 = inlined_call_operand.hbm [shape: f32[2,128], index: 0, kind: input, shape index: {}]   ;;  %s282_s1 = inlined_call_operand.hbm [shape: f32[2,128], index: 1, kind: output, shape index: {0}]   ;;  %s283_s2 = inlined_call_operand.hbm [shape: f32[2,128], index: 2, kind: output, shape index: {1}]  }
   0x1   :  { %9 = vsyncpa [#allocation5], 0 }
   0x2   :  { %10 = vsyncpa [#allocation8], 0  ;;  %s213_s9 = smov [#allocation3]   ;;  %s141_s13 = scalar_lea.hbm %s281_s0, 32 }
   0x3   :  { %s17_s10 = sshll.u32 %s213_s9, 4  ;;  %p142_p0 = scmp.ne.s32.totalorder %s281_s0, %s141_s13  ;;  %s18_s10 = int_to_ptr.vmem [resolvable:$true] %s17_s10 }
   0x4   :  { %p145_p1 = scmp.lt.u32.totalorder %s141_s13, %s281_s0 }
   0x6   :  { %p147_p2 = pnand %p145_p1, %p142_p0 }
   0x8   :  { %150 = shalt.err (!%p147_p2)
}
   0x9   :  { %s151_s18 = scalar_lea.vmem %s18_s10, 32  ;;  %p156_p4 = scmp.lt.s32.totalorder %s18_s10, %s18_s10 }
   0xa   :  { %p152_p3 = scmp.ne.s32.totalorder %s18_s10, %s151_s18  ;;  %p157_p5 = scmp.lt.s32.totalorder %s151_s18, %s151_s18 }
   0xc   :  { %p158_p6 = por %p157_p5, %p156_p4 }
   0xe   :  { %p159_p7 = pnand %p158_p6, %p152_p3 }
  0x10   :  { %162 = shalt.err (!%p159_p7)
}
  0x11   :  { %20 = dma.hbm_to_vmem [thread:$0]  %s281_s0, 32, %s18_s10, [#allocation4]  }
  0x12   :  { %207 = dma.done.wait [#allocation4], 32  }
  0x13   :  { %208 = vsyncadd [#allocation4], 4294967264  ;;  %v29_v0 = vlaneseq  ;;  %v214_v1 = vmov 1983009808   ;;  %v251_v6 = vld [vmem:[#allocation3] sm:$0x3] }
  0x14   :  { %v27_v2 = vunpack.c.l.s4 %v214_v1  ;;  %s215_s21 = smov 16   ;;  %s216_s22 = smov 8   ;;  %vm39_vm0 = vcmask 1041536   ;;  %vm40_vm1 = vcmask 125954   ;;  %vm36_vm2 = vcmask 130048  }
  0x15   :  { %v30_v3 = vshrl.u32 %v29_v0, 7  ;;  %s217_s23 = smov 24   ;;  %s218_s24 = smov 32   ;;  %vm41_vm3 = vmor %vm40_vm1, %vm39_vm0  ;;  %vm43_vm4 = vcmask 58368   ;;  %vm48_vm5 = vcmask 189568   ;;  %vm53_vm6 = vcmask 123968  }
  0x16   :  { %v28_v4 = vunpack.c.0.s8 %v27_v2  ;;  %vm58_vm7 = vcmask 255168   ;;  %s219_s0 = smov 120   ;;  %s220_s25 = smov 104   ;;  %vm76_vm8 = vcmask 982016   ;;  %vm84_vm9 = vcmask 850944  }
  0x17   :  { %s221_s26 = smov 96   ;;  %vm92_vm10 = vcmask 785408   ;;  %s222_s27 = smov [#allocation7]  }
  0x18   :  { %v31_v5 = vsub.s32 %v28_v4, %v30_v3  ;;  %s116_s28 = sshll.u32 %s222_s27, 4  ;;  %s223_s29 = smov [#allocation6]   ;;  %s117_s28 = int_to_ptr.vmem [resolvable:$true] %s116_s28 }
  0x19   :  { %s106_s30 = sshll.u32 %s223_s29, 4  ;;  %s163_s3 = scalar_lea.vmem %s117_s28, 32  ;;  %s107_s30 = int_to_ptr.vmem [resolvable:$true] %s106_s30 }
  0x1a   :  { %v32_v7 = vrot.slane %v251_v6, %v31_v5  ;;  %p164_p8 = scmp.ne.s32.totalorder %s117_s28, %s163_s3  ;;  %p168_p9 = scmp.lt.s32.totalorder %s117_s28, %s117_s28 }
  0x1b   :  { %p169_p10 = scmp.lt.s32.totalorder %s163_s3, %s163_s3 }
  0x1c   :  { %33 = vrot.lane.b32.xlu0 %v32_v7, %s215_s21  ;;  %50 = vrot.lane.b32.xlu1 %v32_v7, %s216_s22 }
  0x1d   :  { %p170_p11 = por %p169_p10, %p168_p9 }
  0x1f   :  { %p171_p12 = pnand %p170_p11, %p164_p8 }
  0x20   :  { %45 = vrot.lane.b32.xlu0 %v32_v7, %s217_s23  ;;  %55 = vrot.lane.b32.xlu1 %v32_v7, %s218_s24 }
  0x8e   :  { %v34_v8 = vpop.permute.xlu0 %33  ;;  %v51_v9 = vpop.permute.xlu1 %50 }
  0x8f   :  { %v35_v10 = vrot.slane %v34_v8, 6 }
  0x91   :  { %v37_v11 = vsel %vm36_vm2, %v35_v10, %v34_v8 }
  0x92   :  { %42 = vst.msk [vmem:[#allocation2] sm:$0xf] %vm41_vm3, %v37_v11  ;;  %v46_v12 = vpop.permute.xlu0 %45  ;;  %v56_v13 = vpop.permute.xlu1 %55 }
  0x93   :  { %44 = vst.msk [vmem:[#allocation2] sm:$0x3] %vm43_vm4, %v251_v6 }
  0x94   :  { %49 = vst.msk [vmem:[#allocation2 + $0x2] sm:$0x3] %vm48_vm5, %v46_v12 }
  0x95   :  { %54 = vst.msk [vmem:[#allocation2] sm:$0x3] %vm53_vm6, %v51_v9 }
  0x96   :  { %59 = vst.msk [vmem:[#allocation2 + $0x2] sm:$0x3] %vm58_vm7, %v56_v13 }
  0x9c   :  { %v60_v18 = vld [vmem:[#allocation2] sm:$0x3] }
  0x9d   :  { %v129_v14 = vld.sshfl [vmem:[#allocation2] sm:$0x33 pattern:$0x76325410]  ;;  %v61_v21 = vadd.f32 %v60_v18, %v251_v6 }
  0x9e   :  { %72 = vrot.lane.b32.xlu0 %v129_v14, %s219_s0  ;;  %v71_v15 = vcombine.high %v129_v14, %v129_v14 }
  0xa0   :  { %74 = vrot.lane.b32.xlu1 %v71_v15, %s219_s0 }
  0xa2   :  { %80 = vrot.lane.b32.xlu0 %v129_v14, %s220_s25 }
  0xa4   :  { %82 = vrot.lane.b32.xlu1 %v71_v15, %s220_s25 }
  0xa6   :  { %88 = vrot.lane.b32.xlu0 %v129_v14, %s221_s26 }
  0xa8   :  { %90 = vrot.lane.b32.xlu1 %v71_v15, %s221_s26 }
 0x110   :  { %v73_v16 = vpop.permute.xlu0 %72 }
 0x112   :  { %v75_v17 = vpop.permute.xlu1 %74 }
 0x113   :  { %v77_v20 = vsel %vm76_vm8, %v73_v16, %v75_v17 }
 0x114   :  { %v81_v19 = vpop.permute.xlu0 %80  ;;  %v79_v24 = vadd.f32 %v77_v20, %v61_v21 }
 0x116   :  { %v83_v22 = vpop.permute.xlu1 %82 }
 0x117   :  { %v85_v23 = vsel %vm84_vm9, %v81_v19, %v83_v22 }
 0x118   :  { %v87_v25 = vadd.f32 %v85_v23, %v79_v24  ;;  %v89_v26 = vpop.permute.xlu0 %88 }
 0x11a   :  { %v91_v27 = vpop.permute.xlu1 %90 }
 0x11b   :  { %v93_v28 = vsel %vm92_vm10, %v89_v26, %v91_v27 }
 0x11c   :  { %v95_v29 = vadd.f32 %v93_v28, %v87_v25 }
 0x11e   :  { %v96_v30 = vmul.f32 0.2, %v95_v29 }
 0x120   :  { %97 = vst [vmem:[#allocation7] sm:$0x3] %v96_v30  ;;  %v98_v31 = vsub.f32 %v251_v6, %v96_v30 }
 0x121   :  { %174 = shalt.err (!%p171_p12)
}
 0x122   :  { %s175_s6 = scalar_lea.hbm %s283_s2, 32 }
 0x123   :  { %p176_p13 = scmp.ne.s32.totalorder %s283_s2, %s175_s6  ;;  %p179_p0 = scmp.lt.u32.totalorder %s175_s6, %s283_s2 }
 0x125   :  { %p181_p1 = pnand %p179_p0, %p176_p13 }
 0x127   :  { %184 = shalt.err (!%p181_p1)
}
 0x128   :  { %119 = dma.vmem_to_hbm [thread:$0]  %s117_s28, 32, %s283_s2, [#allocation8]   ;;  %99 = vst [vmem:[#allocation6] sm:$0x3] %v98_v31 }
 0x129   :  { %s185_s13 = scalar_lea.vmem %s107_s30, 32  ;;  %p190_p3 = scmp.lt.s32.totalorder %s107_s30, %s107_s30 }
 0x12a   :  { %p186_p2 = scmp.ne.s32.totalorder %s107_s30, %s185_s13  ;;  %p191_p4 = scmp.lt.s32.totalorder %s185_s13, %s185_s13 }
 0x12c   :  { %p192_p5 = por %p191_p4, %p190_p3 }
 0x12e   :  { %p193_p6 = pnand %p192_p5, %p186_p2 }
 0x130   :  { %196 = shalt.err (!%p193_p6)
}
 0x131   :  { %s197_s16 = scalar_lea.hbm %s282_s1, 32 }
 0x132   :  { %p198_p7 = scmp.ne.s32.totalorder %s282_s1, %s197_s16  ;;  %p201_p8 = scmp.lt.u32.totalorder %s197_s16, %s282_s1 }
 0x134   :  { %p203_p9 = pnand %p201_p8, %p198_p7 }
 0x136   :  { %206 = shalt.err (!%p203_p9)
}
 0x137   :  { %109 = dma.vmem_to_hbm [thread:$0]  %s107_s30, 32, %s282_s1, [#allocation5]  }
 0x138   :  { %209 = dma.done.wait [#allocation5], 32  }
 0x139   :  { %210 = vsyncadd [#allocation5], 4294967264 }
 0x13a   :  { %211 = dma.done.wait [#allocation8], 32  }
 0x13b   :  { %212 = vsyncadd [#allocation8], 4294967264 }
 0x13c   :  { %126 = vsyncpa [#allocation4], 1 }
 0x13d   :  { %127 = vsyncpa [#allocation5], 1 }
 0x13e   :  { %128 = vsyncpa [#allocation8], 1 }

</bundles_post_ra>
